<compile_context>
chip_gen: v7x
topology: tpu7x:2x2x1
jax: 0.10.0
libtpu: 0.0.40
codegen_flags: <defaults>
</compile_context>

<pallas_src>
import functools

import jax
import jax.numpy as jnp
from jax.experimental import pallas as pl
from jax.experimental.pallas import tpu as pltpu

HIDDEN_DIM = 256
OUTPUT_DIM = 2
DEFAULT_BATCH_TILE = 2048  # sweep 2048-4096 on v6e/v7x; keep ~2048 on v5e (16 MiB scoped VMEM)


def _round_up(n, m):
    return ((n + m - 1) // m) * m


def _mlp_kernel(x_ref, w1_ref, b1_ref, w2_ref, b2_ref, o_ref):
    # In-kernel f32->bf16 casts: VPU filler hidden under the x DMA; avoids a wrapper-side
    # HBM pad/cast pass over x.
    x = x_ref[...].astype(jnp.bfloat16)
    w1 = w1_ref[...].astype(jnp.bfloat16)

    # fc1: (TB, D) @ (D, H) on the MXU, bf16 inputs, f32 accumulate.
    h = jnp.dot(x, w1, preferred_element_type=jnp.float32)
    # bias + ReLU in f32 on the VPU.
    h = jnp.maximum(h + b1_ref[...], 0.0)

    # dropout(p=0.1) is identity in eval mode.
    # TODO(synk): training-mode dropout (pltpu.prng_seed + prng_random_bits mask) not implemented.

    # fc2 in f32: only OUTPUT_DIM real columns; kernel is mem-bound so f32 here is
    # perf-neutral and keeps logits closer to the PyTorch f32 reference.
    out = jnp.dot(h, w2_ref[...], preferred_element_type=jnp.float32)
    o_ref[...] = (out + b2_ref[...]).astype(o_ref.dtype)


@functools.partial(jax.jit, static_argnames=("batch_tile",))
def fc_classifier_forward(x, w1, b1, w2, b2, *, batch_tile=DEFAULT_BATCH_TILE):
    """x: (B, input_dim) f32; w1: (input_dim, hidden); b1: (hidden,) or (1, hidden);
    w2: (hidden, output); b2: (output,) or (1, output). Returns (B, output) f32."""
    B, D = x.shape
    H = w1.shape[1]
    O = w2.shape[1]

    # Batch tile: big tiles for large B (pipelined, amortizes per-step overhead);
    # small B rounds up to 16 rows (bf16 sublane packing).
    TB = min(batch_tile, _round_up(max(B, 16), 16))
    Bp = _round_up(B, TB)

    # Only pad the batch dim, and only when needed (kept fusible into the pallas_call).
    if Bp != B:
        x_in = jnp.zeros((Bp, D), x.dtype).at[:B, :].set(x)
    else:
        x_in = x

    w1_f = w1.astype(jnp.float32)
    b1_f = jnp.reshape(b1, (1, H)).astype(jnp.float32)
    w2_f = w2.astype(jnp.float32)
    b2_f = jnp.reshape(b2, (1, O)).astype(jnp.float32)

    grid = (Bp // TB,)

    flops = 2 * Bp * (D * H + H * O)
    bytes_accessed = (
        Bp * D * 4           # streamed x (f32, unpadded)
        + Bp * O * 4         # streamed output (f32, OUTPUT_DIM columns only)
        + D * H * 4          # w1 (f32, resident)
        + H * O * 4          # w2 (f32, resident)
        + (H + O) * 4        # biases (f32, resident)
    )
    cost = pl.CostEstimate(flops=flops, transcendentals=0, bytes_accessed=bytes_accessed)

    out = pl.pallas_call(
        _mlp_kernel,
        out_shape=jax.ShapeDtypeStruct((Bp, O), jnp.float32),
        grid_spec=pltpu.PrefetchScalarGridSpec(
            num_scalar_prefetch=0,
            grid=grid,
            in_specs=[
                pl.BlockSpec((TB, D), lambda i: (i, 0)),   # x: streamed per batch tile
                pl.BlockSpec((D, H), lambda i: (0, 0)),    # w1: resident
                pl.BlockSpec((1, H), lambda i: (0, 0)),    # b1: resident
                pl.BlockSpec((H, O), lambda i: (0, 0)),    # w2: resident (full-dim block)
                pl.BlockSpec((1, O), lambda i: (0, 0)),    # b2: resident (full-dim block)
            ],
            out_specs=pl.BlockSpec((TB, O), lambda i: (i, 0)),  # narrow output: full-dim last axis
        ),
        compiler_params=pltpu.CompilerParams(
            dimension_semantics=("parallel",),      # shards batch tiles across TCs on v7x
            allow_input_fusion=[True, False, False, False, False],  # fuse x's (rare) pad
        ),
        cost_estimate=cost,
    )(x_in, w1_f, b1_f, w2_f, b2_f)

    if Bp != B:
        out = out[:B, :]
    return out


def init_params(key, input_dim, hidden_dim, output_dim):
    """Deterministic PyTorch-style uniform(-1/sqrt(fan_in), 1/sqrt(fan_in)) init.
    Weights stored transposed vs PyTorch's (out, in) so the kernel computes x @ W."""
    k1, k2, k3, k4 = jax.random.split(key, 4)
    bound1 = 1.0 / jnp.sqrt(jnp.float32(input_dim))
    bound2 = 1.0 / jnp.sqrt(jnp.float32(hidden_dim))
    w1 = jax.random.uniform(k1, (input_dim, hidden_dim), jnp.float32, -bound1, bound1)
    b1 = jax.random.uniform(k2, (1, hidden_dim), jnp.float32, -bound1, bound1)
    w2 = jax.random.uniform(k3, (hidden_dim, output_dim), jnp.float32, -bound2, bound2)
    b2 = jax.random.uniform(k4, (1, output_dim), jnp.float32, -bound2, bound2)
    return w1, b1, w2, b2


if __name__ == "__main__":
    key = jax.random.PRNGKey(0)
    k_x, k_p = jax.random.split(key)

    batch = 8
    input_dim = 32  # small synthetic feature dim

    x = jax.random.normal(k_x, (batch, input_dim), jnp.float32)
    w1, b1, w2, b2 = init_params(k_p, input_dim, HIDDEN_DIM, OUTPUT_DIM)

    out = fc_classifier_forward(x, w1, b1, w2, b2)
    out = jax.block_until_ready(out)

    # Pure-JAX f32 reference of the same math (eval-mode dropout == identity).
    # fc1 runs bf16-in / f32-accumulate on the MXU, so use a bf16-appropriate tolerance.
    ref = jnp.maximum(x @ w1 + b1, 0.0) @ w2 + b2
    assert out.shape == (batch, OUTPUT_DIM)
    assert jnp.allclose(out, ref, atol=3e-2, rtol=3e-2), (
        f"max abs err {jnp.max(jnp.abs(out - ref))}"
    )

    print("KERNEL_OK")
</pallas_src>

<mosaic_0001>
module attributes {stable_mosaic.version = 11 : i64} {
  func.func @_mlp_kernel(%arg0: i32, %arg1: memref<16x32xf32, #tpu.memory_space<vmem>>, %arg2: memref<32x256xf32, #tpu.memory_space<vmem>>, %arg3: memref<1x256xf32, #tpu.memory_space<vmem>>, %arg4: memref<256x2xf32, #tpu.memory_space<vmem>>, %arg5: memref<1x2xf32, #tpu.memory_space<vmem>>, %arg6: memref<16x2xf32, #tpu.memory_space<vmem>>) attributes {dimension_semantics = [#tpu.dimension_semantics<parallel>], iteration_bounds = array<i64: 1>, scalar_prefetch = 0 : i64, scratch_operands = 0 : i64, tpu.core_type = #tpu.core_type<tc>, window_params = [{transform_indices = @transform_0, window_bounds = array<i64: 16, 32>}, {pipeline_mode = #tpu.pipeline_mode<synchronous>, transform_indices = @transform_1, window_bounds = array<i64: 32, 256>}, {pipeline_mode = #tpu.pipeline_mode<synchronous>, transform_indices = @transform_2, window_bounds = array<i64: 1, 256>}, {pipeline_mode = #tpu.pipeline_mode<synchronous>, transform_indices = @transform_3, window_bounds = array<i64: 256, 2>}, {pipeline_mode = #tpu.pipeline_mode<synchronous>, transform_indices = @transform_4, window_bounds = array<i64: 1, 2>}, {transform_indices = @transform_5, window_bounds = array<i64: 16, 2>}]} {
    %c0 = arith.constant 0 : index
    %c0_0 = arith.constant 0 : index
    %0 = vector.load %arg1[%c0, %c0_0] : memref<16x32xf32, #tpu.memory_space<vmem>>, vector<16x32xf32>
    %1 = arith.truncf %0 : vector<16x32xf32> to vector<16x32xbf16>
    %c0_1 = arith.constant 0 : index
    %c0_2 = arith.constant 0 : index
    %2 = vector.load %arg2[%c0_1, %c0_2] : memref<32x256xf32, #tpu.memory_space<vmem>>, vector<32x256xf32>
    %3 = arith.truncf %2 : vector<32x256xf32> to vector<32x256xbf16>
    %cst = arith.constant dense<0.000000e+00> : vector<16x256xf32>
    %4 = tpu.matmul %1, %3, %cst {dimension_numbers = #tpu.dot_dimension_numbers<[1], [0], [0], [1], [0, 0, 1, 1], [], []>} : vector<16x32xbf16>, vector<32x256xbf16>, vector<16x256xf32> -> vector<16x256xf32>
    %c0_3 = arith.constant 0 : index
    %c0_4 = arith.constant 0 : index
    %5 = vector.load %arg3[%c0_3, %c0_4] : memref<1x256xf32, #tpu.memory_space<vmem>>, vector<1x256xf32>
    %6 = vector.broadcast %5 : vector<1x256xf32> to vector<16x256xf32>
    %7 = arith.addf %4, %6 : vector<16x256xf32>
    %cst_5 = arith.constant 0.000000e+00 : f32
    %8 = vector.broadcast %cst_5 : f32 to vector<16x256xf32>
    %9 = arith.maximumf %7, %8 : vector<16x256xf32>
    %c0_6 = arith.constant 0 : index
    %c0_7 = arith.constant 0 : index
    %10 = vector.load %arg4[%c0_6, %c0_7] : memref<256x2xf32, #tpu.memory_space<vmem>>, vector<256x2xf32>
    %cst_8 = arith.constant dense<0.000000e+00> : vector<16x2xf32>
    %11 = tpu.matmul %9, %10, %cst_8 {dimension_numbers = #tpu.dot_dimension_numbers<[1], [0], [0], [1], [0, 0, 1, 1], [], []>} : vector<16x256xf32>, vector<256x2xf32>, vector<16x2xf32> -> vector<16x2xf32>
    %c0_9 = arith.constant 0 : index
    %c0_10 = arith.constant 0 : index
    %12 = vector.load %arg5[%c0_9, %c0_10] : memref<1x2xf32, #tpu.memory_space<vmem>>, vector<1x2xf32>
    %13 = vector.broadcast %12 : vector<1x2xf32> to vector<16x2xf32>
    %14 = arith.addf %11, %13 : vector<16x2xf32>
    %c0_11 = arith.constant 0 : index
    %c0_12 = arith.constant 0 : index
    %15 = vector.load %arg6[%c0_11, %c0_12] : memref<16x2xf32, #tpu.memory_space<vmem>>, vector<16x2xf32>
    tpu.vector_store %arg6[%c0_11, %c0_12], %14 {strides = array<i32>} : memref<16x2xf32, #tpu.memory_space<vmem>>, vector<16x2xf32>,
    return
  }
  func.func @transform_0(%arg0: i32) -> (i32, i32) {
    %c0_i32 = arith.constant 0 : i32
    %c0_i32_0 = arith.constant 0 : i32
    return %arg0, %c0_i32 : i32, i32
  }
  func.func @transform_1(%arg0: i32) -> (i32, i32) {
    %c0_i32 = arith.constant 0 : i32
    %c0_i32_0 = arith.constant 0 : i32
    %c0_i32_1 = arith.constant 0 : i32
    return %c0_i32, %c0_i32_0 : i32, i32
  }
  func.func @transform_2(%arg0: i32) -> (i32, i32) {
    %c0_i32 = arith.constant 0 : i32
    %c0_i32_0 = arith.constant 0 : i32
    %c0_i32_1 = arith.constant 0 : i32
    return %c0_i32, %c0_i32_0 : i32, i32
  }
  func.func @transform_3(%arg0: i32) -> (i32, i32) {
    %c0_i32 = arith.constant 0 : i32
    %c0_i32_0 = arith.constant 0 : i32
    %c0_i32_1 = arith.constant 0 : i32
    return %c0_i32, %c0_i32_0 : i32, i32
  }
  func.func @transform_4(%arg0: i32) -> (i32, i32) {
    %c0_i32 = arith.constant 0 : i32
    %c0_i32_0 = arith.constant 0 : i32
    %c0_i32_1 = arith.constant 0 : i32
    return %c0_i32, %c0_i32_0 : i32, i32
  }
  func.func @transform_5(%arg0: i32) -> (i32, i32) {
    %c0_i32 = arith.constant 0 : i32
    %c0_i32_0 = arith.constant 0 : i32
    return %arg0, %c0_i32 : i32, i32
  }
}

</mosaic_0001>

<bundles_post_ra>
// kernel: fc_classifier_forward.2
= control target key start
LH: loop header
LB: loop body
LE: loop exit
PB: predicated region body
PF: predicated region fallthrough
CT: control target
= control target key end

     0   :  { %v23_v4 = vlaneseq  ;;  %v306_v9 = vmov 0   ;;  %vm61_vm1 = vcmask 261120   ;;  %vm226_vm2 = vcmask 15360   ;;  %s482_s0 = inlined_call_operand.vmem [shape: f32[32,256], index: 0, kind: input, shape index: {}]   ;;  %s483_s1 = inlined_call_operand.vmem [shape: f32[1,256], index: 1, kind: input, shape index: {}]   ;;  %s484_s2 = inlined_call_operand.vmem [shape: f32[256,2], index: 2, kind: input, shape index: {}]   ;;  %s485_s3 = inlined_call_operand.vmem [shape: f32[1,2], index: 3, kind: input, shape index: {}]   ;;  %s486_s4 = inlined_call_operand.vmem [shape: f32[8,32], index: 4, kind: input, shape index: {}]   ;;  %s487_s5 = inlined_call_operand.<no memory space> [shape: f32[], index: 5, kind: input, shape index: {}]   ;;  %s488_s6 = inlined_call_operand.vmem [shape: f32[16,2], index: 6, kind: output, shape index: {}]  }
   0x1   :  { %v11_v0 = vstv %s487_s5  ;;  %v38_v1 = vld [vmem:[%s482_s0 + $0x8] sm:$0xff]  ;;  %v40_v2 = vld [vmem:[%s482_s0 + $0x18] sm:$0xff]  ;;  %v37_v3 = vld [vmem:[%s482_s0] sm:$0xff]  ;;  %97 = vmatprep.mubr.bf16.mxu0 %v306_v9 }
   0x2   :  { %v46_v5 = vpack.c.bf16 %v40_v2, %v38_v1  ;;  %v39_v6 = vld [vmem:[%s482_s0 + $0x10] sm:$0xff]  ;;  %v42_v7 = vld [vmem:[%s482_s0 + $0x28] sm:$0xff]  ;;  %v44_v8 = vld [vmem:[%s482_s0 + $0x38] sm:$0xff]  ;;  %v24_v15 = vand.u32 127, %v23_v4 }
   0x3   :  { %v45_v10 = vpack.c.bf16 %v39_v6, %v37_v3  ;;  %v48_v11 = vpack.c.bf16 %v44_v8, %v42_v7  ;;  %v41_v12 = vld [vmem:[%s482_s0 + $0x20] sm:$0xff]  ;;  %v43_v13 = vld [vmem:[%s482_s0 + $0x30] sm:$0xff]  ;;  %v129_v17 = vld [vmem:[%s484_s2 + $0x88] sm:$0xff]  ;;  %v52_v3 = vshrl.u32 %v23_v4, 7 }
   0x4   :  { %v22_v14 = vld [vmem:[%s486_s4] sm:$0xff]  ;;  %65 = vmatprep.subr.bf16.mxu0 %v46_v5  ;;  %v47_v19 = vpack.c.bf16 %v43_v13, %v41_v12  ;;  %vm26_vm0 = vcmp.lt.s32.totalorder %v24_v15, 32  ;;  %v113_v21 = vld [vmem:[%s484_s2 + $0x8] sm:$0xff]  ;;  %v130_v22 = vld [vmem:[%s484_s2 + $0x90] sm:$0xff] }
   0x5   :  { %v128_v16 = vld [vmem:[%s484_s2 + $0x80] sm:$0xff]  ;;  %66 = vmatpush1.bf16.msra.mxu0 %v45_v10  ;;  %v131_v23 = vld [vmem:[%s484_s2 + $0x98] sm:$0xff]  ;;  %v27_v24 = vsel %vm26_vm0, %v22_v14, %v11_v0  ;;  %v114_v27 = vld [vmem:[%s484_s2 + $0x10] sm:$0xff]  ;;  %v53_v5 = vsub.s32 0, %v52_v3  ;;  %v57_v7 = vsub.s32 1, %v52_v3 }
   0x6   :  { %v112_v18 = vld [vmem:[%s484_s2] sm:$0xff]  ;;  %v273_v20 = vpack.c.bf16 %v129_v17, %v128_v16  ;;  %67 = vmatprep.subr.bf16.mxu0 %v48_v11  ;;  %v277_v26 = vpack.c.bf16 %v131_v23, %v130_v22  ;;  %v115_v28 = vld [vmem:[%s484_s2 + $0x18] sm:$0xff]  ;;  %v133_v30 = vld [vmem:[%s484_s2 + $0xa8] sm:$0xff]  ;;  %v36_v31 = vpack.c.bf16 %v11_v0, %v27_v24 }
   0x7   :  { %v275_v25 = vpack.c.bf16 %v113_v21, %v112_v18  ;;  %v132_v29 = vld [vmem:[%s484_s2 + $0xa0] sm:$0xff]  ;;  %v279_v32 = vpack.c.bf16 %v115_v28, %v114_v27  ;;  %v117_v35 = vld [vmem:[%s484_s2 + $0x28] sm:$0xff]  ;;  %v134_v36 = vld [vmem:[%s484_s2 + $0xb0] sm:$0xff] }
   0x8   :  { %274 = vmatprep.subr.bf16.mxu1 %v273_v20  ;;  %v281_v33 = vpack.c.bf16 %v133_v30, %v132_v29  ;;  %v116_v34 = vld [vmem:[%s484_s2 + $0x20] sm:$0xff]  ;;  %v135_v37 = vld [vmem:[%s484_s2 + $0xb8] sm:$0xff]  ;;  %v118_v40 = vld [vmem:[%s484_s2 + $0x30] sm:$0xff] }
   0x9   :  { %276 = vmatpush3.bf16.msra.mxu1 %v275_v25  ;;  %68 = vmatpush1.bf16.msra.mxu0 %v47_v19  ;;  %v283_v38 = vpack.c.bf16 %v117_v35, %v116_v34  ;;  %v285_v39 = vpack.c.bf16 %v135_v37, %v134_v36  ;;  %v119_v41 = vld [vmem:[%s484_s2 + $0x38] sm:$0xff]  ;;  %v136_v42 = vld [vmem:[%s484_s2 + $0xc0] sm:$0xff]  ;;  %v137_v43 = vld [vmem:[%s484_s2 + $0xc8] sm:$0xff] }
   0xa   :  { %278 = vmatprep.subr.bf16.mxu1 %v277_v26  ;;  %v287_v44 = vpack.c.bf16 %v119_v41, %v118_v40  ;;  %v289_v45 = vpack.c.bf16 %v137_v43, %v136_v42  ;;  %v120_v46 = vld [vmem:[%s484_s2 + $0x40] sm:$0xff]  ;;  %v121_v47 = vld [vmem:[%s484_s2 + $0x48] sm:$0xff]  ;;  %v138_v48 = vld [vmem:[%s484_s2 + $0xd0] sm:$0xff] }
   0xb   :  { %v139_v49 = vld [vmem:[%s484_s2 + $0xd8] sm:$0xff]  ;;  %v291_v50 = vpack.c.bf16 %v121_v47, %v120_v46  ;;  %v122_v52 = vld [vmem:[%s484_s2 + $0x50] sm:$0xff]  ;;  %v140_v54 = vld [vmem:[%s484_s2 + $0xe0] sm:$0xff] }
   0xc   :  { %233 = vmatmul.mubr.msk.bf16.vlgmr.msra.gmra.mrb[0].mxu0 %vm61_vm1, %v36_v31  ;;  %v293_v51 = vpack.c.bf16 %v139_v49, %v138_v48  ;;  %v123_v53 = vld [vmem:[%s484_s2 + $0x58] sm:$0xff]  ;;  %v141_v55 = vld [vmem:[%s484_s2 + $0xe8] sm:$0xff]  ;;  %v124_v58 = vld [vmem:[%s484_s2 + $0x60] sm:$0xff] }
   0xd   :  { %280 = vmatpush3.bf16.msra.mxu1 %v279_v32  ;;  %v295_v56 = vpack.c.bf16 %v123_v53, %v122_v52  ;;  %v297_v57 = vpack.c.bf16 %v141_v55, %v140_v54  ;;  %v125_v59 = vld [vmem:[%s484_s2 + $0x68] sm:$0xff]  ;;  %v142_v61 = vld [vmem:[%s484_s2 + $0xf0] sm:$0xff]  ;;  %v143_v62 = vld [vmem:[%s484_s2 + $0xf8] sm:$0xff] }
   0xe   :  { %282 = vmatprep.subr.bf16.mxu1 %v281_v33  ;;  %v299_v60 = vpack.c.bf16 %v125_v59, %v124_v58  ;;  %v301_v63 = vpack.c.bf16 %v143_v62, %v142_v61  ;;  %v126_v0 = vld [vmem:[%s484_s2 + $0x70] sm:$0xff]  ;;  %v127_v1 = vld [vmem:[%s484_s2 + $0x78] sm:$0xff]  ;;  %v49_v6 = vld [vmem:[%s483_s1] sm:$0x3] }
   0xf   :  { %v303_v2 = vpack.c.bf16 %v127_v1, %v126_v0  ;;  %v54_v8 = vrot.slane %v49_v6, %v53_v5  ;;  %v58_v9 = vrot.slane %v49_v6, %v57_v7  ;;  %v234_v22 = vld [vmem:[%s485_s3] ss:$0 sm:$0xff] }
  0x11   :  { %284 = vmatpush3.bf16.msra.mxu1 %v283_v38 }
  0x12   :  { %286 = vmatprep.subr.bf16.mxu1 %v285_v39 }
  0x15   :  { %288 = vmatpush3.bf16.msra.mxu1 %v287_v44 }
  0x16   :  { %290 = vmatprep.subr.bf16.mxu1 %v289_v45 }
  0x19   :  { %292 = vmatpush3.bf16.msra.mxu1 %v291_v50 }
  0x1a   :  { %294 = vmatprep.subr.bf16.mxu1 %v293_v51 }
  0x1d   :  { %296 = vmatpush3.bf16.msra.mxu1 %v295_v56 }
  0x1e   :  { %298 = vmatprep.subr.bf16.mxu1 %v297_v57 }
  0x21   :  { %300 = vmatpush3.bf16.msra.mxu1 %v299_v60 }
  0x22   :  { %302 = vmatprep.subr.bf16.mxu1 %v301_v63 }
  0x25   :  { %304 = vmatpush3.bf16.msra.mxu1 %v303_v2 }
  0xdf   :  { %v99_v10 = vpop.f32.mrb[0].mxu0 }
  0xe0   :  { %v100_v11 = vadd.f32 %v99_v10, %v54_v8  ;;  %v101_v12 = vpop.f32.mrb[1].mxu0 }
  0xe1   :  { %v103_v13 = vpop.f32.mrb[2].mxu0  ;;  %v102_v14 = vadd.f32 %v101_v12, %v58_v9 }
  0xe2   :  { %v104_v15 = vadd.f32 %v103_v13, %v54_v8  ;;  %v105_v16 = vpop.f32.mrb[3].mxu0  ;;  %v108_v19 = vmax.f32 %v100_v11, 0.0 }
  0xe3   :  { %v106_v17 = vadd.f32 %v105_v16, %v58_v9  ;;  %v109_v18 = vmax.f32 %v102_v14, 0.0 }
  0xe4   :  { %v110_v4 = vmax.f32 %v104_v15, 0.0 }
  0xe5   :  { %v111_v20 = vmax.f32 %v106_v17, 0.0  ;;  %215 = vmatprep.mubr.f32.mxu1 %v109_v18 }
  0xe6   :  { %216 = vmatmul.mubr.f32.vlgmr.msra.gmra.mrb[0].mxu1 %v108_v19 }
  0xe7   :  { %220 = vmatprep.mubr.f32.mxu1 %v111_v20 }
  0xea   :  { %221 = vmatmul.mubr.f32.gmra.mrb[2].mxu1 %v110_v4 }
 0x1b9   :  { %v267_v21 = vpop.f32.mrb[0].mxu1 }
 0x1ba   :  { %v268_v23 = vpop.f32.mrb[1].mxu1 }
 0x1bb   :  { %v269_v24 = vadd.f32 %v268_v23, %v267_v21 }
 0x1bd   :  { %v218_v25 = vadd.f32 %v269_v24, %v234_v22  ;;  %v270_v26 = vpop.f32.mrb[2].mxu1 }
 0x1be   :  { %v271_v27 = vpop.f32.mrb[3].mxu1 }
 0x1bf   :  { %227 = vst.msk [vmem:[%s488_s6] sm:$0xff] %vm226_vm2, %v218_v25  ;;  %v272_v28 = vadd.f32 %v271_v27, %v270_v26 }
 0x1c1   :  { %v223_v29 = vadd.f32 %v272_v28, %v234_v22 }
 0x1c3   :  { %228 = vst.msk [vmem:[%s488_s6 + $0x8] sm:$0xff] %vm226_vm2, %v223_v29 }

</bundles_post_ra>
